<compile_context>
chip_gen: v7x
topology: tpu7x:2x2x1
jax: 0.10.0
libtpu: 0.0.40
codegen_flags: <defaults>
</compile_context>

<pallas_src>
import jax
import jax.numpy as jnp
from jax import lax
from jax.experimental import pallas as pl
from jax.experimental.pallas import tpu as pltpu


def _round_up(x, m):
    return ((x + m - 1) // m) * m


# ----------------------------------------------------------------------------
# Kernel 1: pairwise squared distances   dist2[s, l] = ||trg[s] - coords[l]||^2
# Pure VPU broadcast; memory bound on the coords stream.
# ----------------------------------------------------------------------------
def _dist_kernel(trg_ref, coords_ref, out_ref):
    t = trg_ref[...]                    # [tS, 2]  f32
    c = coords_ref[...]                 # [2, tL]  f32
    dx = t[:, 0:1] - c[0:1, :]          # [tS, tL] (lane + sublane broadcasts)
    dy = t[:, 1:2] - c[1:2, :]
    out_ref[...] = dx * dx + dy * dy


def pairwise_sq_dists(trg_coords, coords_2xL, *, tile_s, tile_l):
    S, _ = trg_coords.shape
    _, L = coords_2xL.shape
    assert S % tile_s == 0 and L % tile_l == 0
    return pl.pallas_call(
        _dist_kernel,
        out_shape=jax.ShapeDtypeStruct((S, L), jnp.float32),
        grid=(S // tile_s, L // tile_l),
        in_specs=[
            pl.BlockSpec((tile_s, 2), lambda i, j: (i, 0)),
            pl.BlockSpec((2, tile_l), lambda i, j: (0, j)),
        ],
        out_specs=pl.BlockSpec((tile_s, tile_l), lambda i, j: (i, j)),
        compiler_params=pltpu.CompilerParams(
            dimension_semantics=("parallel", "parallel"),
            vmem_limit_bytes=32 * 1024 * 1024,
        ),
    )(trg_coords, coords_2xL)


# ----------------------------------------------------------------------------
# Kernel 2: negative sampling from the k-nearest candidate table.
#   rand_ref    [R, tS, num_negs] int32   pre-drawn uniform indices in [0, K)
#   nearby_ref  [tS, K]           int32   candidate location ids
#   visited_ref [tS, K]           int32   0/1 visited flags for this user
#   out_ref     [tS, num_negs]    int32   sampled negative location ids
# ----------------------------------------------------------------------------
def _make_sample_kernel(tile_s, K, num_negs, num_retries, exclude_visited):
    def kernel(rand_ref, nearby_ref, visited_ref, out_ref):
        nearby = nearby_ref[...]                                     # [tS, K]
        # Hoisted once (JAX does not CSE broadcast_in_dim); reused by every
        # gather inside the retry loop.
        lane_iota = lax.broadcasted_iota(jnp.int32, (tile_s, num_negs, K), 2)

        def gather(table, idx):
            # out[s, n] = table[s, idx[s, n]] via one-hot compare + lane reduce.
            oh = (lane_iota == idx[:, :, None]).astype(jnp.int32)
            return jnp.sum(oh * table[:, None, :], axis=-1)          # [tS, nn]

        if not exclude_visited:
            out_ref[...] = gather(nearby, rand_ref[0])
            return

        visited = visited_ref[...]                                   # [tS, K]
        # Pre-mask the candidate table once: rejected candidates become -1, so
        # the retry loop needs a single gather per round (no separate visited
        # gather, no post-loop gathers).
        masked = jnp.where(visited > 0, -1, nearby)

        cand = gather(masked, rand_ref[0])                           # [tS, nn]
        for r in range(1, num_retries + 1):
            nxt = gather(masked, rand_ref[r])
            cand = jnp.where(cand < 0, nxt, cand)

        # Deterministic fallback after bounded retries: smallest unvisited
        # nearby candidate.  If every candidate is visited (the original code
        # would loop forever) fall back to the nearest candidate nearby[:, 0].
        big = jnp.int32(2 ** 30)
        fb = jnp.min(jnp.where(visited > 0, big, nearby),
                     axis=-1, keepdims=True)                         # [tS, 1]
        fb = jnp.where(fb >= big, nearby[:, 0:1], fb)
        out_ref[...] = jnp.where(cand < 0, fb, cand)

    return kernel


def sample_negs(rand_idx, nearby, visited_nearby, *, num_retries,
                exclude_visited, tile_s):
    R, S, num_negs = rand_idx.shape
    _, K = nearby.shape
    assert S % tile_s == 0
    kernel = _make_sample_kernel(tile_s, K, num_negs, num_retries,
                                 exclude_visited)
    return pl.pallas_call(
        kernel,
        out_shape=jax.ShapeDtypeStruct((S, num_negs), jnp.int32),
        grid=(S // tile_s,),
        in_specs=[
            pl.BlockSpec((R, tile_s, num_negs), lambda i: (0, i, 0)),
            pl.BlockSpec((tile_s, K), lambda i: (i, 0)),
            pl.BlockSpec((tile_s, K), lambda i: (i, 0)),
        ],
        out_specs=pl.BlockSpec((tile_s, num_negs), lambda i: (i, 0)),
        compiler_params=pltpu.CompilerParams(
            dimension_semantics=("parallel",)),
    )(rand_idx, nearby, visited_nearby)


# ----------------------------------------------------------------------------
# Module analogue
# ----------------------------------------------------------------------------
class KNNSamplerPallas:
    """JAX/Pallas analogue of KNNSampler (state='training').

    coords       : [n_locs, 2] f32   synthetic loc_query_sys coordinate table
    visited_mask : [n_users, n_locs] bool  dense user_visited_locs
    Output ids are int32 (torch.long analogue; fine while n_locs < 2**31).
    """

    def __init__(self, coords, n_nearest, visited_mask, state, exclude_visited,
                 *, tile_l=2048, max_retries=8):
        self.n_nearest = int(n_nearest)
        self.state = state
        self.exclude_visited = bool(exclude_visited)
        self.max_retries = int(max_retries)
        self.visited_mask = visited_mask

        coords = jnp.asarray(coords, jnp.float32)
        n_locs, d = coords.shape
        assert d == 2
        self.n_locs = n_locs
        self.coords = coords                                   # [n_locs, 2]

        # Location axis tiling: cap tile_l (v7x VMEM) and keep it a multiple of
        # 128; pad the table with far-away dummy points to a tile multiple.
        tl = min(int(tile_l), _round_up(n_locs, 128))
        tl = _round_up(tl, 128)
        self.tile_l = tl
        L_pad = _round_up(n_locs, tl)
        coords_t = jnp.full((2, L_pad), 1e7, jnp.float32)
        self.coords_2xL = coords_t.at[:, :n_locs].set(coords.T)   # [2, L_pad]

    def __call__(self, trg_seq, num_negs, user, key=None, seed=0):
        if self.state != "training":
            # TODO(synk): 'evaluating'/else deterministic-walk branches.
            raise NotImplementedError("only the 'training' branch is implemented")

        trg_seq = jnp.asarray(trg_seq)
        # Original iterates check_ins and uses check_in[1] as the location id.
        trg_locs = trg_seq[:, 1] if trg_seq.ndim == 2 else trg_seq
        trg_locs = trg_locs.astype(jnp.int32)
        S = int(trg_locs.shape[0])
        # Parallel S grid axis (useful on v7x's 2 TensorCores) once S is big.
        tile_s = 256 if (S > 256 and S % 256 == 0) else S

        # Gather target coordinates (glue).
        trg_coords = jnp.take(self.coords, trg_locs, axis=0)          # [S, 2]

        # Hot path 1: pairwise squared distances (Pallas, VPU, memory bound).
        dist2 = pairwise_sq_dists(trg_coords, self.coords_2xL,
                                  tile_s=tile_s, tile_l=self.tile_l)  # [S, Lp]

        # k-nearest selection (glue).
        _, nearby = lax.top_k(-dist2, self.n_nearest)                 # [S, K]
        nearby = jnp.minimum(nearby.astype(jnp.int32), self.n_locs - 1)

        # Per-candidate visited flags for this user (glue gather).
        visited_u = self.visited_mask[user].astype(jnp.int32)         # [n_locs]
        visited_nearby = jnp.take(visited_u, nearby)                  # [S, K]

        # Pre-draw all uniform candidate indices in one call (host PRNG; TPU
        # stateful PRNG has no interpret lowering and K need not be pow2 now).
        if key is None:
            key = jax.random.PRNGKey(seed)
        n_rounds = (self.max_retries + 1) if self.exclude_visited else 1
        rand_idx = jax.random.randint(
            key, (n_rounds, S, num_negs), 0, self.n_nearest, dtype=jnp.int32)

        # Hot path 2: rejection sampling over the candidate table (Pallas).
        return sample_negs(rand_idx, nearby, visited_nearby,
                           num_retries=self.max_retries,
                           exclude_visited=self.exclude_visited,
                           tile_s=tile_s)                             # [S, nn]


if __name__ == "__main__":
    key = jax.random.PRNGKey(0)
    k_coord, k_visit, k_seq, k_samp = jax.random.split(key, 4)

    n_locs, n_users = 512, 4
    seq_len, n_nearest, num_negs = 8, 128, 16

    coords = jax.random.uniform(k_coord, (n_locs, 2), jnp.float32)
    visited = jax.random.bernoulli(k_visit, 0.3, (n_users, n_locs))
    trg_seq = jax.random.randint(k_seq, (seq_len,), 0, n_locs, jnp.int32)

    sampler = KNNSamplerPallas(coords, n_nearest, visited,
                               state="training", exclude_visited=True)

    neg_samples = sampler(trg_seq, num_negs, user=1, key=k_samp)
    neg_samples = jax.block_until_ready(neg_samples)

    assert neg_samples.shape == (seq_len, num_negs)
    assert neg_samples.dtype == jnp.int32
    assert bool(jnp.all(neg_samples >= 0)) and bool(jnp.all(neg_samples < n_locs))
    # exclude_visited=True: every sampled negative must be unvisited by user 1.
    assert not bool(jnp.any(visited[1][neg_samples]))
    print("KERNEL_OK")
</pallas_src>

<mosaic_0001>
module attributes {stable_mosaic.version = 11 : i64} {
  func.func @_dist_kernel(%arg0: i32, %arg1: i32, %arg2: memref<8x2xf32, #tpu.memory_space<vmem>>, %arg3: memref<2x512xf32, #tpu.memory_space<vmem>>, %arg4: memref<8x512xf32, #tpu.memory_space<vmem>>) attributes {dimension_semantics = [#tpu.dimension_semantics<parallel>, #tpu.dimension_semantics<parallel>], iteration_bounds = array<i64: 1, 1>, scalar_prefetch = 0 : i64, scratch_operands = 0 : i64, tpu.core_type = #tpu.core_type<tc>, window_params = [{transform_indices = @transform_0, window_bounds = array<i64: 8, 2>}, {transform_indices = @transform_1, window_bounds = array<i64: 2, 512>}, {transform_indices = @transform_2, window_bounds = array<i64: 8, 512>}]} {
    %c0 = arith.constant 0 : index
    %c0_0 = arith.constant 0 : index
    %0 = vector.load %arg2[%c0, %c0_0] : memref<8x2xf32, #tpu.memory_space<vmem>>, vector<8x2xf32>
    %c0_1 = arith.constant 0 : index
    %c0_2 = arith.constant 0 : index
    %1 = vector.load %arg3[%c0_1, %c0_2] : memref<2x512xf32, #tpu.memory_space<vmem>>, vector<2x512xf32>
    %2 = vector.extract_strided_slice %0 {offsets = [0, 0], sizes = [8, 1], strides = [1, 1]} : vector<8x2xf32> to vector<8x1xf32>
    %3 = vector.extract_strided_slice %1 {offsets = [0, 0], sizes = [1, 512], strides = [1, 1]} : vector<2x512xf32> to vector<1x512xf32>
    %4 = vector.broadcast %2 : vector<8x1xf32> to vector<8x512xf32>
    %5 = vector.broadcast %3 : vector<1x512xf32> to vector<8x512xf32>
    %6 = arith.subf %4, %5 : vector<8x512xf32>
    %7 = vector.extract_strided_slice %0 {offsets = [0, 1], sizes = [8, 1], strides = [1, 1]} : vector<8x2xf32> to vector<8x1xf32>
    %8 = vector.extract_strided_slice %1 {offsets = [1, 0], sizes = [1, 512], strides = [1, 1]} : vector<2x512xf32> to vector<1x512xf32>
    %9 = vector.broadcast %7 : vector<8x1xf32> to vector<8x512xf32>
    %10 = vector.broadcast %8 : vector<1x512xf32> to vector<8x512xf32>
    %11 = arith.subf %9, %10 : vector<8x512xf32>
    %12 = arith.mulf %6, %6 : vector<8x512xf32>
    %13 = arith.mulf %11, %11 : vector<8x512xf32>
    %14 = arith.addf %12, %13 : vector<8x512xf32>
    %c0_3 = arith.constant 0 : index
    %c0_4 = arith.constant 0 : index
    %15 = vector.load %arg4[%c0_3, %c0_4] : memref<8x512xf32, #tpu.memory_space<vmem>>, vector<8x512xf32>
    tpu.vector_store %arg4[%c0_3, %c0_4], %14 {strides = array<i32>} : memref<8x512xf32, #tpu.memory_space<vmem>>, vector<8x512xf32>,
    return
  }
  func.func @transform_0(%arg0: i32, %arg1: i32) -> (i32, i32) {
    %c0_i32 = arith.constant 0 : i32
    %c0_i32_0 = arith.constant 0 : i32
    return %arg0, %c0_i32 : i32, i32
  }
  func.func @transform_1(%arg0: i32, %arg1: i32) -> (i32, i32) {
    %c0_i32 = arith.constant 0 : i32
    %c0_i32_0 = arith.constant 0 : i32
    return %c0_i32, %arg1 : i32, i32
  }
  func.func @transform_2(%arg0: i32, %arg1: i32) -> (i32, i32) {
    %c0_i32 = arith.constant 0 : i32
    return %arg0, %arg1 : i32, i32
  }
}

</mosaic_0001>

<bundles_post_ra>
// kernel: tpu_custom_call.1
= control target key start
LH: loop header
LB: loop body
LE: loop exit
PB: predicated region body
PF: predicated region fallthrough
CT: control target
= control target key end

     0   :  { %s199_s0 = inlined_call_operand.vmem [shape: f32[8,2], index: 0, kind: input, shape index: {}]   ;;  %s200_s1 = inlined_call_operand.vmem [shape: f32[2,512], index: 1, kind: input, shape index: {}]   ;;  %s201_s2 = inlined_call_operand.hbm [shape: f32[8,512], index: 2, kind: output, shape index: {}]  }
   0x1   :  { %v12_v0 = vld [vmem:[%s199_s0] sm:$0xff] }
   0x2   :  { %7 = vsyncpa [#allocation3], 0  ;;  %v163_v1 = vmov 0   ;;  %v164_v2 = vmov 1   ;;  %v20_v3 = vlaneseq  ;;  %v13_v9 = vld [vmem:[%s200_s1] sm:$0xff]  ;;  %s165_s0 = smov [#allocation2]  }
   0x3   :  { %137 = vset.pattern.permute.xlu0 %v163_v1  ;;  %s126_s1 = sshll.u32 %s165_s0, 4  ;;  %s127_s1 = int_to_ptr.vmem [resolvable:$true] %s126_s1 }
   0x4   :  { %16 = vperm.xlu0 %137, %v12_v0   ;;  %v21_v4 = vshrl.u32 %v20_v3, 7  ;;  %s139_s13 = scalar_lea.vmem %s127_s1, 512  ;;  %p144_p1 = scmp.lt.s32.totalorder %s127_s1, %s127_s1 }
   0x5   :  { %p140_p0 = scmp.ne.s32.totalorder %s127_s1, %s139_s13  ;;  %p145_p2 = scmp.lt.s32.totalorder %s139_s13, %s139_s13 }
   0x6   :  { %v22_v5 = vsub.s32 0, %v21_v4  ;;  %v26_v6 = vsub.s32 2, %v21_v4  ;;  %v30_v7 = vsub.s32 4, %v21_v4  ;;  %v34_v8 = vsub.s32 6, %v21_v4 }
   0x7   :  { %v66_v10 = vsub.s32 1, %v21_v4  ;;  %v70_v11 = vsub.s32 3, %v21_v4  ;;  %v74_v12 = vsub.s32 5, %v21_v4  ;;  %v78_v13 = vsub.s32 7, %v21_v4  ;;  %p146_p3 = por %p145_p2, %p144_p1 }
   0x8   :  { %138 = vset.pattern.permute.xlu0 %v164_v2  ;;  %v23_v14 = vrot.slane %v13_v9, %v22_v5  ;;  %v27_v15 = vrot.slane %v13_v9, %v26_v6  ;;  %v31_v16 = vrot.slane %v13_v9, %v30_v7  ;;  %v35_v17 = vrot.slane %v13_v9, %v34_v8 }
   0x9   :  { %61 = vperm.xlu0 %138, %v12_v0   ;;  %v67_v18 = vrot.slane %v13_v9, %v66_v10  ;;  %v71_v19 = vrot.slane %v13_v9, %v70_v11  ;;  %v75_v20 = vrot.slane %v13_v9, %v74_v12  ;;  %v79_v21 = vrot.slane %v13_v9, %v78_v13  ;;  %p147_p4 = pnand %p146_p3, %p140_p0 }
   0xa   :  { %v43_v22 = vrot.slane %v23_v14, %v22_v5  ;;  %v47_v23 = vrot.slane %v27_v15, %v22_v5  ;;  %v51_v24 = vrot.slane %v31_v16, %v22_v5  ;;  %v55_v25 = vrot.slane %v35_v17, %v22_v5 }
   0xb   :  { %v87_v27 = vrot.slane %v67_v18, %v66_v10  ;;  %v91_v28 = vrot.slane %v71_v19, %v66_v10  ;;  %v95_v29 = vrot.slane %v75_v20, %v66_v10  ;;  %v99_v30 = vrot.slane %v79_v21, %v66_v10 }
  0x83   :  { %v17_v26 = vpop.permute.xlu0 %16 }
  0x84   :  { %v56_v31 = vsub.f32 %v17_v26, %v43_v22  ;;  %v57_v32 = vsub.f32 %v17_v26, %v47_v23  ;;  %v58_v33 = vsub.f32 %v17_v26, %v51_v24  ;;  %v59_v34 = vsub.f32 %v17_v26, %v55_v25 }
  0x86   :  { %v104_v40 = vmul.f32 %v56_v31, %v56_v31  ;;  %v105_v41 = vmul.f32 %v57_v32, %v57_v32  ;;  %v106_v42 = vmul.f32 %v58_v33, %v58_v33  ;;  %v107_v43 = vmul.f32 %v59_v34, %v59_v34 }
  0x88   :  { %v62_v35 = vpop.permute.xlu0 %61 }
  0x89   :  { %v100_v36 = vsub.f32 %v62_v35, %v87_v27  ;;  %v101_v37 = vsub.f32 %v62_v35, %v91_v28  ;;  %v102_v38 = vsub.f32 %v62_v35, %v95_v29  ;;  %v103_v39 = vsub.f32 %v62_v35, %v99_v30 }
  0x8b   :  { %v108_v44 = vmul.f32 %v100_v36, %v100_v36  ;;  %v109_v45 = vmul.f32 %v101_v37, %v101_v37  ;;  %v110_v46 = vmul.f32 %v102_v38, %v102_v38  ;;  %v111_v47 = vmul.f32 %v103_v39, %v103_v39 }
  0x8d   :  { %v112_v48 = vadd.f32 %v108_v44, %v104_v40  ;;  %v113_v49 = vadd.f32 %v109_v45, %v105_v41  ;;  %v114_v50 = vadd.f32 %v110_v46, %v106_v42  ;;  %v115_v51 = vadd.f32 %v111_v47, %v107_v43 }
  0x8f   :  { %116 = vst [vmem:[#allocation2] sm:$0xff] %v112_v48  ;;  %117 = vst [vmem:[#allocation2 + $0x8] sm:$0xff] %v113_v49 }
  0x90   :  { %118 = vst [vmem:[#allocation2 + $0x10] sm:$0xff] %v114_v50  ;;  %119 = vst [vmem:[#allocation2 + $0x18] sm:$0xff] %v115_v51 }
  0x91   :  { %150 = shalt.err (!%p147_p4)
}
  0x92   :  { %s151_s16 = scalar_lea.hbm %s201_s2, 512 }
  0x93   :  { %p152_p5 = scmp.ne.s32.totalorder %s201_s2, %s151_s16  ;;  %p155_p6 = scmp.lt.u32.totalorder %s151_s16, %s201_s2 }
  0x95   :  { %p157_p7 = pnand %p155_p6, %p152_p5 }
  0x97   :  { %160 = shalt.err (!%p157_p7)
}
  0x98   :  { %129 = dma.vmem_to_hbm [thread:$0]  %s127_s1, 512, %s201_s2, [#allocation3]  }
  0x99   :  { %161 = dma.done.wait [#allocation3], 512  }
  0x9a   :  { %162 = vsyncadd [#allocation3], 4294966784 }
  0x9b   :  { %133 = vsyncpa [#allocation3], 1 }

</bundles_post_ra>
